<compile_context>
chip_gen: v7x
topology: tpu7x:2x2x1
jax: 0.10.0
libtpu: 0.0.40
codegen_flags: <defaults>
</compile_context>

<pallas_src>
import numpy as np
import jax
import jax.numpy as jnp
from jax import lax
from jax.experimental import pallas as pl
from jax.experimental.pallas import tpu as pltpu

N_LMK = 543
C = N_LMK * 3            # 1629 flattened coords per frame
FACE_END = 468 * 3       # 1404
LEFT_END = 489 * 3       # 1467
POSE_END = 522 * 3       # 1566
HAND_START = 1280        # lane-aligned (10*128) window start covering both hand groups
W_HAND = C - HAND_START  # 349


def _round_up(n, m):
    return ((n + m - 1) // m) * m


def feature_gen(x, tile_t=512):
    """JAX/Pallas equivalent of FeatureGen.forward. x: (T, 543, 3) f32 -> (3258,) f32."""
    T = int(x.shape[0])
    if T == 0:
        # torch: mean/std over empty -> NaN -> replaced by 0
        return jnp.zeros((2 * C,), jnp.float32)

    xf = jnp.asarray(x, jnp.float32).reshape(T, C)   # free reshape, no padding copy

    tile = min(max(8, _round_up(tile_t, 8)), max(8, _round_up(T, 8)))
    grid_t = pl.cdiv(T, tile)

    def _kernel(x_ref, out_ref, cnt_ref, sum_ref, sq_ref):
        pid = pl.program_id(0)

        @pl.when(pid == 0)
        def _init():
            cnt_ref[...] = jnp.zeros_like(cnt_ref)
            sum_ref[...] = jnp.zeros_like(sum_ref)
            sq_ref[...] = jnp.zeros_like(sq_ref)

        x = x_ref[...]                                              # (tile, C)

        # Row validity: masks padding rows of the (possibly partial) last tile.
        rows = lax.broadcasted_iota(jnp.int32, (tile, 1), 0) + pid * tile
        rv = rows < T                                               # (tile, 1) bool

        # Per-frame hand-NaN flags, computed only on the lane-aligned hand window.
        xh = x[:, HAND_START:]                                      # (tile, 349)
        ch = lax.broadcasted_iota(jnp.int32, (1, W_HAND), 1) + HAND_START
        isn_h = xh != xh
        lmask_h = (ch >= FACE_END) & (ch < LEFT_END)
        rmask_h = ch >= POSE_END
        left_nan = jnp.sum(jnp.where(isn_h & lmask_h, 1.0, 0.0),
                           axis=1, keepdims=True) > 0.0             # (tile, 1)
        right_nan = jnp.sum(jnp.where(isn_h & rmask_h, 1.0, 0.0),
                            axis=1, keepdims=True) > 0.0            # (tile, 1)

        # Per-element validity: hand columns drop NaN rows; face/pose keep all real
        # rows (their NaNs propagate through the sums exactly like torch).
        cols = lax.broadcasted_iota(jnp.int32, (1, C), 1)
        left_cols = (cols >= FACE_END) & (cols < LEFT_END)
        right_cols = cols >= POSE_END
        drop = (left_cols & left_nan) | (right_cols & right_nan)    # (tile, C)
        valid = rv & jnp.logical_not(drop)                          # (tile, C)

        xm = jnp.where(valid, x, 0.0)
        cnt_ref[...] += jnp.sum(jnp.where(valid, 1.0, 0.0), axis=0, keepdims=True)
        sum_ref[...] += jnp.sum(xm, axis=0, keepdims=True)
        sq_ref[...] += jnp.sum(xm * xm, axis=0, keepdims=True)

        @pl.when(pid == pl.num_programs(0) - 1)
        def _finalize():
            cnt = cnt_ref[...]
            s = sum_ref[...]
            ss = sq_ref[...]
            mean = s / cnt                                          # NaN if cnt==0 / NaN col
            # unbiased variance; exact 0/0 -> NaN for cnt==1; maximum() keeps NaN
            var = jnp.maximum((ss - s * mean) / (cnt - 1.0), 0.0)
            std = jnp.sqrt(var)
            out_ref[0:1, :] = jnp.where(jnp.isnan(mean), 0.0, mean)
            out_ref[1:2, :] = jnp.where(jnp.isnan(std), 0.0, std)

    out = pl.pallas_call(
        _kernel,
        out_shape=jax.ShapeDtypeStruct((2, C), jnp.float32),
        grid=(grid_t,),
        in_specs=[pl.BlockSpec((tile, C), lambda i: (i, 0))],
        out_specs=pl.BlockSpec((2, C), lambda i: (0, 0)),
        scratch_shapes=[pltpu.VMEM((1, C), jnp.float32),   # count
                        pltpu.VMEM((1, C), jnp.float32),   # sum
                        pltpu.VMEM((1, C), jnp.float32)],  # sum of squares
        compiler_params=pltpu.CompilerParams(dimension_semantics=("arbitrary",)),
    )(xf)

    # Column groups are contiguous, so row 0 is [x1m, x2m, x3m, x4m] and row 1 is
    # [x1s, x2s, x3s, x4s]; flattening reproduces the torch concat order exactly.
    return out.reshape(-1)


def ref_forward(x_np):
    """NumPy reference replicating the PyTorch semantics (unbiased std, NaN handling)."""
    x_np = np.asarray(x_np, np.float32)
    T = x_np.shape[0]
    face = x_np[:, :468, :].reshape(T, -1)
    lefth = x_np[:, 468:489, :].reshape(T, -1)
    pose = x_np[:, 489:522, :].reshape(T, -1)
    righth = x_np[:, 522:, :].reshape(T, -1)
    lefth = lefth[~np.any(np.isnan(lefth), axis=1)]
    righth = righth[~np.any(np.isnan(righth), axis=1)]

    def m(a):
        return a.mean(axis=0) if a.shape[0] > 0 else np.full(a.shape[1], np.nan, np.float32)

    def s(a):
        return a.std(axis=0, ddof=1) if a.shape[0] > 1 else np.full(a.shape[1], np.nan, np.float32)

    feat = np.concatenate([m(face), m(lefth), m(pose), m(righth),
                           s(face), s(lefth), s(pose), s(righth)]).astype(np.float32)
    return np.where(np.isnan(feat), np.float32(0.0), feat)


if __name__ == "__main__":
    root = jax.random.PRNGKey(0)
    k1, k2 = jax.random.split(root)

    # Case 1: single-tile path (T = 8), NaNs in hands + a stray face NaN.
    T = 8
    x = jax.random.normal(k1, (T, N_LMK, 3), dtype=jnp.float32)
    x = x.at[2, 468:489, :].set(jnp.nan)   # left hand fully missing in frame 2
    x = x.at[3, 470, 1].set(jnp.nan)       # one left-hand coord NaN in frame 3
    x = x.at[5, 522:543, :].set(jnp.nan)   # right hand missing in frame 5
    x = x.at[0, 10, 0].set(jnp.nan)        # stray face NaN in frame 0

    out = jax.block_until_ready(feature_gen(x))
    ref = ref_forward(np.asarray(x))
    assert out.shape == (2 * C,), out.shape
    np.testing.assert_allclose(np.asarray(out), ref, rtol=1e-4, atol=1e-5)

    # Case 2: multi-tile path with a non-dividing grid (T = 37, tile = 16) to exercise
    # edge-block row masking and the streaming accumulators.
    T2 = 37
    x2 = jax.random.normal(k2, (T2, N_LMK, 3), dtype=jnp.float32)
    x2 = x2.at[5, 468:489, :].set(jnp.nan)
    x2 = x2.at[20, 530, 2].set(jnp.nan)
    x2 = x2.at[33, 468:489, :].set(jnp.nan)
    out2 = jax.block_until_ready(feature_gen(x2, tile_t=16))
    ref2 = ref_forward(np.asarray(x2))
    np.testing.assert_allclose(np.asarray(out2), ref2, rtol=1e-4, atol=1e-5)

    print("KERNEL_OK")
</pallas_src>

<mosaic_0001>
module attributes {stable_mosaic.version = 11 : i64} {
  func.func @_kernel(%arg0: i32, %arg1: memref<8x1629xf32, #tpu.memory_space<vmem>>, %arg2: memref<2x1629xf32, #tpu.memory_space<vmem>>, %arg3: memref<1x1629xf32, #tpu.memory_space<vmem>>, %arg4: memref<1x1629xf32, #tpu.memory_space<vmem>>, %arg5: memref<1x1629xf32, #tpu.memory_space<vmem>>) attributes {dimension_semantics = [#tpu.dimension_semantics<arbitrary>], iteration_bounds = array<i64: 1>, scalar_prefetch = 0 : i64, scratch_operands = 3 : i64, tpu.core_type = #tpu.core_type<tc>, window_params = [{transform_indices = @transform_0, window_bounds = array<i64: 8, 1629>}, {pipeline_mode = #tpu.pipeline_mode<synchronous>, transform_indices = @transform_1, window_bounds = array<i64: 2, 1629>}]} {
    %c0_i32 = arith.constant 0 : i32
    %0 = arith.cmpi eq, %arg0, %c0_i32 : i32
    %1 = arith.extui %0 : i1 to i32
    %c0_i32_0 = arith.constant 0 : i32
    %2 = arith.cmpi ne, %1, %c0_i32_0 : i32
    scf.if %2 {
      %cst_34 = arith.constant 0.000000e+00 : f32
      %82 = vector.broadcast %cst_34 : f32 to vector<1x1629xf32>
      %c0_35 = arith.constant 0 : index
      %c0_36 = arith.constant 0 : index
      %83 = vector.load %arg3[%c0_35, %c0_36] : memref<1x1629xf32, #tpu.memory_space<vmem>>, vector<1x1629xf32>
      tpu.vector_store %arg3[%c0_35, %c0_36], %82 {strides = array<i32>} : memref<1x1629xf32, #tpu.memory_space<vmem>>, vector<1x1629xf32>,
      %cst_37 = arith.constant 0.000000e+00 : f32
      %84 = vector.broadcast %cst_37 : f32 to vector<1x1629xf32>
      %c0_38 = arith.constant 0 : index
      %c0_39 = arith.constant 0 : index
      %85 = vector.load %arg4[%c0_38, %c0_39] : memref<1x1629xf32, #tpu.memory_space<vmem>>, vector<1x1629xf32>
      tpu.vector_store %arg4[%c0_38, %c0_39], %84 {strides = array<i32>} : memref<1x1629xf32, #tpu.memory_space<vmem>>, vector<1x1629xf32>,
      %cst_40 = arith.constant 0.000000e+00 : f32
      %86 = vector.broadcast %cst_40 : f32 to vector<1x1629xf32>
      %c0_41 = arith.constant 0 : index
      %c0_42 = arith.constant 0 : index
      %87 = vector.load %arg5[%c0_41, %c0_42] : memref<1x1629xf32, #tpu.memory_space<vmem>>, vector<1x1629xf32>
      tpu.vector_store %arg5[%c0_41, %c0_42], %86 {strides = array<i32>} : memref<1x1629xf32, #tpu.memory_space<vmem>>, vector<1x1629xf32>,
    } else {
    }
    %c0 = arith.constant 0 : index
    %c0_1 = arith.constant 0 : index
    %3 = vector.load %arg1[%c0, %c0_1] : memref<8x1629xf32, #tpu.memory_space<vmem>>, vector<8x1629xf32>
    %4 = tpu.iota {dimensions = array<i32: 0>} : vector<8x1xi32>
    %c8_i32 = arith.constant 8 : i32
    %5 = arith.muli %arg0, %c8_i32 : i32
    %6 = vector.broadcast %5 : i32 to vector<8x1xi32>
    %7 = arith.addi %4, %6 : vector<8x1xi32>
    %c8_i32_2 = arith.constant 8 : i32
    %8 = vector.broadcast %c8_i32_2 : i32 to vector<8x1xi32>
    %9 = arith.cmpi slt, %7, %8 : vector<8x1xi32>
    %10 = vector.extract_strided_slice %3 {offsets = [0, 1280], sizes = [8, 349], strides = [1, 1]} : vector<8x1629xf32> to vector<8x349xf32>
    %11 = tpu.iota {dimensions = array<i32: 1>} : vector<1x349xi32>
    %c1280_i32 = arith.constant 1280 : i32
    %12 = vector.broadcast %c1280_i32 : i32 to vector<1x349xi32>
    %13 = arith.addi %11, %12 : vector<1x349xi32>
    %14 = arith.cmpf one, %10, %10 : vector<8x349xf32>
    %c1404_i32 = arith.constant 1404 : i32
    %15 = vector.broadcast %c1404_i32 : i32 to vector<1x349xi32>
    %16 = arith.cmpi sge, %13, %15 : vector<1x349xi32>
    %c1467_i32 = arith.constant 1467 : i32
    %17 = vector.broadcast %c1467_i32 : i32 to vector<1x349xi32>
    %18 = arith.cmpi slt, %13, %17 : vector<1x349xi32>
    %19 = arith.andi %16, %18 : vector<1x349xi1>
    %c1566_i32 = arith.constant 1566 : i32
    %20 = vector.broadcast %c1566_i32 : i32 to vector<1x349xi32>
    %21 = arith.cmpi sge, %13, %20 : vector<1x349xi32>
    %22 = vector.broadcast %19 : vector<1x349xi1> to vector<8x349xi1>
    %23 = arith.andi %14, %22 : vector<8x349xi1>
    %cst = arith.constant 1.000000e+00 : f32
    %cst_3 = arith.constant 0.000000e+00 : f32
    %24 = vector.broadcast %cst : f32 to vector<8x349xf32>
    %25 = vector.broadcast %cst_3 : f32 to vector<8x349xf32>
    %26 = arith.select %23, %24, %25 : vector<8x349xi1>, vector<8x349xf32>
    %cst_4 = arith.constant dense<0.000000e+00> : vector<8xf32>
    %27 = vector.multi_reduction <add>, %26, %cst_4 [1] : vector<8x349xf32> to vector<8xf32>
    %28 = vector.shape_cast %27 : vector<8xf32> to vector<8x1xf32>
    %cst_5 = arith.constant 0.000000e+00 : f32
    %29 = vector.broadcast %cst_5 : f32 to vector<8x1xf32>
    %30 = arith.cmpf ogt, %28, %29 : vector<8x1xf32>
    %31 = vector.broadcast %21 : vector<1x349xi1> to vector<8x349xi1>
    %32 = arith.andi %14, %31 : vector<8x349xi1>
    %cst_6 = arith.constant 1.000000e+00 : f32
    %cst_7 = arith.constant 0.000000e+00 : f32
    %33 = vector.broadcast %cst_6 : f32 to vector<8x349xf32>
    %34 = vector.broadcast %cst_7 : f32 to vector<8x349xf32>
    %35 = arith.select %32, %33, %34 : vector<8x349xi1>, vector<8x349xf32>
    %cst_8 = arith.constant dense<0.000000e+00> : vector<8xf32>
    %36 = vector.multi_reduction <add>, %35, %cst_8 [1] : vector<8x349xf32> to vector<8xf32>
    %37 = vector.shape_cast %36 : vector<8xf32> to vector<8x1xf32>
    %cst_9 = arith.constant 0.000000e+00 : f32
    %38 = vector.broadcast %cst_9 : f32 to vector<8x1xf32>
    %39 = arith.cmpf ogt, %37, %38 : vector<8x1xf32>
    %40 = tpu.iota {dimensions = array<i32: 1>} : vector<1x1629xi32>
    %c1404_i32_10 = arith.constant 1404 : i32
    %41 = vector.broadcast %c1404_i32_10 : i32 to vector<1x1629xi32>
    %42 = arith.cmpi sge, %40, %41 : vector<1x1629xi32>
    %c1467_i32_11 = arith.constant 1467 : i32
    %43 = vector.broadcast %c1467_i32_11 : i32 to vector<1x1629xi32>
    %44 = arith.cmpi slt, %40, %43 : vector<1x1629xi32>
    %45 = arith.andi %42, %44 : vector<1x1629xi1>
    %c1566_i32_12 = arith.constant 1566 : i32
    %46 = vector.broadcast %c1566_i32_12 : i32 to vector<1x1629xi32>
    %47 = arith.cmpi sge, %40, %46 : vector<1x1629xi32>
    %48 = vector.broadcast %45 : vector<1x1629xi1> to vector<8x1629xi1>
    %49 = vector.broadcast %30 : vector<8x1xi1> to vector<8x1629xi1>
    %50 = arith.andi %48, %49 : vector<8x1629xi1>
    %51 = vector.broadcast %47 : vector<1x1629xi1> to vector<8x1629xi1>
    %52 = vector.broadcast %39 : vector<8x1xi1> to vector<8x1629xi1>
    %53 = arith.andi %51, %52 : vector<8x1629xi1>
    %54 = arith.ori %50, %53 : vector<8x1629xi1>
    %cst_13 = arith.constant dense<true> : vector<8x1629xi1>
    %55 = arith.xori %54, %cst_13 : vector<8x1629xi1>
    %56 = vector.broadcast %9 : vector<8x1xi1> to vector<8x1629xi1>
    %57 = arith.andi %56, %55 : vector<8x1629xi1>
    %cst_14 = arith.constant 0.000000e+00 : f32
    %58 = vector.broadcast %cst_14 : f32 to vector<8x1629xf32>
    %59 = arith.select %57, %3, %58 : vector<8x1629xi1>, vector<8x1629xf32>
    %c0_15 = arith.constant 0 : index
    %c0_16 = arith.constant 0 : index
    %60 = vector.load %arg3[%c0_15, %c0_16] : memref<1x1629xf32, #tpu.memory_space<vmem>>, vector<1x1629xf32>
    %cst_17 = arith.constant 1.000000e+00 : f32
    %cst_18 = arith.constant 0.000000e+00 : f32
    %61 = vector.broadcast %cst_17 : f32 to vector<8x1629xf32>
    %62 = vector.broadcast %cst_18 : f32 to vector<8x1629xf32>
    %63 = arith.select %57, %61, %62 : vector<8x1629xi1>, vector<8x1629xf32>
    %cst_19 = arith.constant dense<0.000000e+00> : vector<1629xf32>
    %64 = vector.multi_reduction <add>, %63, %cst_19 [0] : vector<8x1629xf32> to vector<1629xf32>
    %65 = vector.shape_cast %64 : vector<1629xf32> to vector<1x1629xf32>
    %66 = arith.addf %60, %65 : vector<1x1629xf32>
    %c0_20 = arith.constant 0 : index
    %c0_21 = arith.constant 0 : index
    %67 = vector.load %arg3[%c0_20, %c0_21] : memref<1x1629xf32, #tpu.memory_space<vmem>>, vector<1x1629xf32>
    tpu.vector_store %arg3[%c0_20, %c0_21], %66 {strides = array<i32>} : memref<1x1629xf32, #tpu.memory_space<vmem>>, vector<1x1629xf32>,
    %c0_22 = arith.constant 0 : index
    %c0_23 = arith.constant 0 : index
    %68 = vector.load %arg4[%c0_22, %c0_23] : memref<1x1629xf32, #tpu.memory_space<vmem>>, vector<1x1629xf32>
    %cst_24 = arith.constant dense<0.000000e+00> : vector<1629xf32>
    %69 = vector.multi_reduction <add>, %59, %cst_24 [0] : vector<8x1629xf32> to vector<1629xf32>
    %70 = vector.shape_cast %69 : vector<1629xf32> to vector<1x1629xf32>
    %71 = arith.addf %68, %70 : vector<1x1629xf32>
    %c0_25 = arith.constant 0 : index
    %c0_26 = arith.constant 0 : index
    %72 = vector.load %arg4[%c0_25, %c0_26] : memref<1x1629xf32, #tpu.memory_space<vmem>>, vector<1x1629xf32>
    tpu.vector_store %arg4[%c0_25, %c0_26], %71 {strides = array<i32>} : memref<1x1629xf32, #tpu.memory_space<vmem>>, vector<1x1629xf32>,
    %c0_27 = arith.constant 0 : index
    %c0_28 = arith.constant 0 : index
    %73 = vector.load %arg5[%c0_27, %c0_28] : memref<1x1629xf32, #tpu.memory_space<vmem>>, vector<1x1629xf32>
    %74 = arith.mulf %59, %59 : vector<8x1629xf32>
    %cst_29 = arith.constant dense<0.000000e+00> : vector<1629xf32>
    %75 = vector.multi_reduction <add>, %74, %cst_29 [0] : vector<8x1629xf32> to vector<1629xf32>
    %76 = vector.shape_cast %75 : vector<1629xf32> to vector<1x1629xf32>
    %77 = arith.addf %73, %76 : vector<1x1629xf32>
    %c0_30 = arith.constant 0 : index
    %c0_31 = arith.constant 0 : index
    %78 = vector.load %arg5[%c0_30, %c0_31] : memref<1x1629xf32, #tpu.memory_space<vmem>>, vector<1x1629xf32>
    tpu.vector_store %arg5[%c0_30, %c0_31], %77 {strides = array<i32>} : memref<1x1629xf32, #tpu.memory_space<vmem>>, vector<1x1629xf32>,
    %c0_i32_32 = arith.constant 0 : i32
    %79 = arith.cmpi eq, %arg0, %c0_i32_32 : i32
    %80 = arith.extui %79 : i1 to i32
    %c0_i32_33 = arith.constant 0 : i32
    %81 = arith.cmpi ne, %80, %c0_i32_33 : i32
    scf.if %81 {
      %c0_34 = arith.constant 0 : index
      %c0_35 = arith.constant 0 : index
      %82 = vector.load %arg3[%c0_34, %c0_35] : memref<1x1629xf32, #tpu.memory_space<vmem>>, vector<1x1629xf32>
      %c0_36 = arith.constant 0 : index
      %c0_37 = arith.constant 0 : index
      %83 = vector.load %arg4[%c0_36, %c0_37] : memref<1x1629xf32, #tpu.memory_space<vmem>>, vector<1x1629xf32>
      %c0_38 = arith.constant 0 : index
      %c0_39 = arith.constant 0 : index
      %84 = vector.load %arg5[%c0_38, %c0_39] : memref<1x1629xf32, #tpu.memory_space<vmem>>, vector<1x1629xf32>
      %85 = arith.divf %83, %82 : vector<1x1629xf32>
      %86 = arith.mulf %83, %85 : vector<1x1629xf32>
      %87 = arith.subf %84, %86 : vector<1x1629xf32>
      %cst_40 = arith.constant 1.000000e+00 : f32
      %88 = vector.broadcast %cst_40 : f32 to vector<1x1629xf32>
      %89 = arith.subf %82, %88 : vector<1x1629xf32>
      %90 = arith.divf %87, %89 : vector<1x1629xf32>
      %cst_41 = arith.constant 0.000000e+00 : f32
      %91 = vector.broadcast %cst_41 : f32 to vector<1x1629xf32>
      %92 = arith.maximumf %90, %91 : vector<1x1629xf32>
      %93 = math.sqrt %92 : vector<1x1629xf32>
      %94 = arith.cmpf one, %85, %85 : vector<1x1629xf32>
      %cst_42 = arith.constant 0.000000e+00 : f32
      %95 = vector.broadcast %cst_42 : f32 to vector<1x1629xf32>
      %96 = arith.select %94, %95, %85 : vector<1x1629xi1>, vector<1x1629xf32>
      %c0_43 = arith.constant 0 : index
      %c0_44 = arith.constant 0 : index
      %97 = vector.load %arg2[%c0_43, %c0_44] : memref<2x1629xf32, #tpu.memory_space<vmem>>, vector<1x1629xf32>
      tpu.vector_store %arg2[%c0_43, %c0_44], %96 {strides = array<i32>} : memref<2x1629xf32, #tpu.memory_space<vmem>>, vector<1x1629xf32>,
      %98 = arith.cmpf one, %93, %93 : vector<1x1629xf32>
      %cst_45 = arith.constant 0.000000e+00 : f32
      %99 = vector.broadcast %cst_45 : f32 to vector<1x1629xf32>
      %100 = arith.select %98, %99, %93 : vector<1x1629xi1>, vector<1x1629xf32>
      %c1 = arith.constant 1 : index
      %c0_46 = arith.constant 0 : index
      %101 = vector.load %arg2[%c1, %c0_46] : memref<2x1629xf32, #tpu.memory_space<vmem>>, vector<1x1629xf32>
      tpu.vector_store %arg2[%c1, %c0_46], %100 {strides = array<i32>} : memref<2x1629xf32, #tpu.memory_space<vmem>>, vector<1x1629xf32>,
    } else {
    }
    return
  }
  func.func @transform_0(%arg0: i32) -> (i32, i32) {
    %c0_i32 = arith.constant 0 : i32
    %c0_i32_0 = arith.constant 0 : i32
    return %arg0, %c0_i32 : i32, i32
  }
  func.func @transform_1(%arg0: i32) -> (i32, i32) {
    %c0_i32 = arith.constant 0 : i32
    %c0_i32_0 = arith.constant 0 : i32
    %c0_i32_1 = arith.constant 0 : i32
    return %c0_i32, %c0_i32_0 : i32, i32
  }
}

</mosaic_0001>

<bundles_post_ra>
// kernel: tpu_custom_call.1
= control target key start
LH: loop header
LB: loop body
LE: loop exit
PB: predicated region body
PF: predicated region fallthrough
CT: control target
= control target key end

     0   :  { %6 = vsyncpa [#allocation6], 0  ;;  %s1192_s0 = inlined_call_operand.hbm [shape: f32[8,1629], index: 0, kind: input, shape index: {}]   ;;  %s1193_s1 = inlined_call_operand.hbm [shape: f32[2,1629], index: 1, kind: output, shape index: {}]  }
   0x1   :  { %7 = vsyncpa [#allocation7], 0  ;;  %s1033_s6 = smov [#allocation5]   ;;  %s985_s10 = scalar_lea.hbm %s1192_s0, 1664 }
   0x2   :  { %s14_s7 = sshll.u32 %s1033_s6, 4  ;;  %p986_p0 = scmp.ne.s32.totalorder %s1192_s0, %s985_s10  ;;  %s15_s7 = int_to_ptr.vmem [resolvable:$true] %s14_s7 }
   0x3   :  { %p989_p1 = scmp.lt.u32.totalorder %s985_s10, %s1192_s0 }
   0x5   :  { %p991_p2 = pnand %p989_p1, %p986_p0 }
   0x7   :  { %994 = shalt.err (!%p991_p2)
}
   0x8   :  { %s995_s15 = scalar_lea.vmem %s15_s7, 1664  ;;  %p1000_p4 = scmp.lt.s32.totalorder %s15_s7, %s15_s7 }
   0x9   :  { %p996_p3 = scmp.ne.s32.totalorder %s15_s7, %s995_s15  ;;  %p1001_p5 = scmp.lt.s32.totalorder %s995_s15, %s995_s15 }
   0xb   :  { %p1002_p6 = por %p1001_p5, %p1000_p4 }
   0xd   :  { %p1003_p7 = pnand %p1002_p6, %p996_p3 }
   0xf   :  { %1006 = shalt.err (!%p1003_p7)
}
  0x10   :  { %17 = dma.hbm_to_vmem [thread:$0]  %s1192_s0, 1664, %s15_s7, [#allocation6]  }
  0x11   :  { %1029 = dma.done.wait [#allocation6], 1664  }
  0x12   :  { %1030 = vsyncadd [#allocation6], 4294965632  ;;  %v26_v0 = vlaneseq  ;;  %v1069_v7 = vld [vmem:[#allocation5 + $0x50] sm:$0xff]  ;;  %v1071_v8 = vld [vmem:[#allocation5 + $0x58] sm:$0xff]  ;;  %v1034_v10 = vmov 0.0   ;;  %vm89_vm9 = vcmask 760832  }
  0x13   :  { %v1073_v9 = vld [vmem:[#allocation5 + $0x60] sm:$0xff]  ;;  %vm61_vm1 = vcmp.ne.f32.partialorder %v1069_v7, %v1069_v7  ;;  %vm62_vm2 = vcmp.ne.f32.partialorder %v1071_v8, %v1071_v8  ;;  %v1035_v17 = vmov 1.0   ;;  %v1036_v23 = vmov 1966171168   ;;  %v36_v33 = vld [vmem:[#allocation5 + $0x8] sm:$0xff]  ;;  %v37_v34 = vld [vmem:[#allocation5 + $0x10] sm:$0xff] }
  0x14   :  { %v1061_v1 = vand.u32 127, %v26_v0  ;;  %vm63_vm4 = vcmp.ne.f32.partialorder %v1073_v9, %v1073_v9  ;;  %vm1087_vm10 = vcmp.lt.s32.totalorder %v26_v0, 605  ;;  %v317_v18 = vrot.slane %v1035_v17, 4  ;;  %v35_v31 = vld [vmem:[#allocation5] sm:$0xff]  ;;  %v38_v35 = vld [vmem:[#allocation5 + $0x18] sm:$0xff]  ;;  %v40_v37 = vld [vmem:[#allocation5 + $0x28] sm:$0xff] }
  0x15   :  { %30 = vst.msk [vmem:[#allocation2 + $0x8] sm:$0x1f] %vm1087_vm10, %v1034_v10  ;;  %32 = vst.msk [vmem:[#allocation3 + $0x8] sm:$0x1f] %vm1087_vm10, %v1034_v10  ;;  %v414_v24 = vunpack.c.l.s4 %v1036_v23  ;;  %v417_v27 = vshrl.u32 %v26_v0, 7  ;;  %v39_v36 = vld [vmem:[#allocation5 + $0x20] sm:$0xff] }
  0x16   :  { %v56_v2 = vadd.s32 128, %v1061_v1  ;;  %v1065_v3 = vadd.s32 1280, %v1061_v1  ;;  %v57_v4 = vadd.s32 256, %v1061_v1  ;;  %34 = vst.msk [vmem:[#allocation4 + $0x8] sm:$0x1f] %vm1087_vm10, %v1034_v10  ;;  %v318_v19 = vadd.f32 1.0, %v317_v18 }
  0x17   :  { %v415_v26 = vunpack.c.0.s8 %v414_v24  ;;  %v1107_v38 = vld [vmem:[#allocation5 + $0x30] sm:$0xff]  ;;  %v509_v41 = vrot.slane %v35_v31, 4  ;;  %v515_v42 = vrot.slane %v36_v33, 4  ;;  %v521_v43 = vrot.slane %v37_v34, 4  ;;  %v42_v44 = vld [vmem:[#allocation5 + $0x38] sm:$0xff]  ;;  %s1038_s0 = smov [#allocation8]  }
  0x18   :  { %v59_v5 = vadd.s32 1280, %v56_v2  ;;  %vm64_vm0 = vcmp.ge.s32.totalorder %v1065_v3, 1404  ;;  %v60_v6 = vadd.s32 1280, %v57_v4  ;;  %v319_v20 = vrot.slane %v318_v19, 2  ;;  %s956_s18 = sshll.u32 %s1038_s0, 4  ;;  %s957_s18 = int_to_ptr.vmem [resolvable:$true] %s956_s18 }
  0x19   :  { %vm82_vm5 = vmand %vm61_vm1, %vm64_vm0  ;;  %v1100_v29 = vsub.s32 %v415_v26, %v417_v27  ;;  %v527_v45 = vrot.slane %v38_v35, 4  ;;  %v533_v46 = vrot.slane %v39_v36, 4  ;;  %v539_v47 = vrot.slane %v40_v37, 4  ;;  %s1007_s19 = scalar_lea.vmem %s957_s18, 416  ;;  %p1012_p9 = scmp.lt.s32.totalorder %s957_s18, %s957_s18 }
  0x1a   :  { %vm68_vm3 = vcmp.lt.s32.totalorder %v59_v5, 1467  ;;  %vm75_vm6 = vcmp.ge.s32.totalorder %v60_v6, 1566  ;;  %v85_v11 = vsel %vm82_vm5, 1.0, %v1034_v10  ;;  %v320_v21 = vadd.f32 %v319_v20, %v318_v19  ;;  %p1008_p8 = scmp.ne.s32.totalorder %s957_s18, %s1007_s19  ;;  %p1013_p10 = scmp.lt.s32.totalorder %s1007_s19, %s1007_s19 }
  0x1b   :  { %vm83_vm7 = vmand %vm62_vm2, %vm68_vm3  ;;  %v545_v48 = vrot.slane %v1107_v38, 4  ;;  %v510_v49 = vadd.f32 %v509_v41, %v35_v31  ;;  %v516_v50 = vadd.f32 %v515_v42, %v36_v33  ;;  %v522_v51 = vadd.f32 %v521_v43, %v37_v34 }
  0x1c   :  { %v86_v12 = vsel %vm83_vm7, 1.0, %v1034_v10  ;;  %vm103_vm8 = vmand %vm63_vm4, %vm75_vm6  ;;  %v321_v22 = vrot.slane %v320_v21, 1  ;;  %v528_v52 = vadd.f32 %v527_v45, %v38_v35  ;;  %v534_v53 = vadd.f32 %v533_v46, %v39_v36  ;;  %p1014_p11 = por %p1013_p10, %p1012_p9 }
  0x1d   :  { %v88_v13 = vadd.f32 %v86_v12, %v85_v11  ;;  %v106_v14 = vsel %vm103_vm8, 1.0, %v1034_v10  ;;  %v540_v54 = vadd.f32 %v539_v47, %v40_v37  ;;  %v546_v55 = vadd.f32 %v545_v48, %v1107_v38 }
  0x1e   :  { %v108_v15 = vsel %vm89_vm9, %v106_v14, 0.0  ;;  %v322_v25 = vadd.f32 %v321_v22, %v320_v21  ;;  %v511_v56 = vrot.slane %v510_v49, 2  ;;  %v517_v57 = vrot.slane %v516_v50, 2  ;;  %p1015_p12 = pnand %p1014_p11, %p1008_p8 }
  0x1f   :  { %92 = vadd.xlane.f32.xlu0 %v88_v13  ;;  %v523_v58 = vrot.slane %v522_v51, 2  ;;  %v551_v59 = vrot.slane %v42_v44, 4  ;;  %v529_v60 = vrot.slane %v528_v52, 2  ;;  %v535_v61 = vrot.slane %v534_v53, 2 }
  0x20   :  { %v409_v28 = vcombine.low %v322_v25, %v322_v25  ;;  %v541_v62 = vrot.slane %v540_v54, 2  ;;  %v547_v63 = vrot.slane %v546_v55, 2  ;;  %v512_v0 = vadd.f32 %v511_v56, %v510_v49 }
  0x21   :  { %v518_v2 = vadd.f32 %v517_v57, %v516_v50  ;;  %v524_v4 = vadd.f32 %v523_v58, %v522_v51  ;;  %v552_v5 = vadd.f32 %v551_v59, %v42_v44  ;;  %v530_v6 = vadd.f32 %v529_v60, %v528_v52 }
  0x22   :  { %v1103_v30 = vrot.slane %v409_v28, %v1100_v29  ;;  %v536_v11 = vadd.f32 %v535_v61, %v534_v53  ;;  %v542_v12 = vadd.f32 %v541_v62, %v540_v54  ;;  %v548_v13 = vadd.f32 %v547_v63, %v546_v55 }
  0x23   :  { %110 = vadd.xlane.f32.xlu0 %v108_v15  ;;  %v513_v14 = vrot.slane %v512_v0, 1  ;;  %v519_v15 = vrot.slane %v518_v2, 1  ;;  %v525_v17 = vrot.slane %v524_v4, 1  ;;  %v553_v18 = vrot.slane %v552_v5, 2 }
  0x24   :  { %v441_v32 = vcombine.low %v1103_v30, %v1103_v30  ;;  %v531_v19 = vrot.slane %v530_v6, 1  ;;  %v537_v20 = vrot.slane %v536_v11, 1  ;;  %v543_v21 = vrot.slane %v542_v12, 1 }
  0x25   :  { %v549_v22 = vrot.slane %v548_v13, 1  ;;  %v514_v23 = vadd.f32 %v513_v14, %v512_v0  ;;  %v520_v24 = vadd.f32 %v519_v15, %v518_v2  ;;  %v526_v25 = vadd.f32 %v525_v17, %v524_v4 }
  0x26   :  { %v449_v39 = vrot.slane %v441_v32, %v1100_v29  ;;  %v554_v26 = vadd.f32 %v553_v18, %v552_v5  ;;  %v532_v27 = vadd.f32 %v531_v19, %v530_v6  ;;  %v538_v28 = vadd.f32 %v537_v20, %v536_v11 }
  0x27   :  { %v544_v32 = vadd.f32 %v543_v21, %v542_v12  ;;  %v601_v42 = vcombine.low %v514_v23, %v520_v24  ;;  %v697_v43 = vmul.f32 %v35_v31, %v35_v31  ;;  %v698_v45 = vmul.f32 %v36_v33, %v36_v33 }
  0x28   :  { %v1110_v40 = vcombine.low %v449_v39, %v449_v39  ;;  %v550_v39 = vadd.f32 %v549_v22, %v548_v13  ;;  %v555_v41 = vrot.slane %v554_v26, 1  ;;  %v602_v46 = vcombine.low %v526_v25, %v532_v27 }
  0x29   :  { %v603_v47 = vcombine.low %v538_v28, %v544_v32  ;;  %v699_v48 = vmul.f32 %v37_v34, %v37_v34  ;;  %v700_v49 = vmul.f32 %v38_v35, %v38_v35  ;;  %v611_v51 = vrot.slane %v601_v42, %v1100_v29 }
  0x2a   :  { %v556_v50 = vadd.f32 %v555_v41, %v554_v26  ;;  %v701_v52 = vmul.f32 %v39_v36, %v39_v36  ;;  %v702_v53 = vmul.f32 %v40_v37, %v40_v37  ;;  %v618_v54 = vrot.slane %v602_v46, %v1100_v29 }
  0x2b   :  { %v625_v55 = vrot.slane %v603_v47, %v1100_v29  ;;  %v703_v56 = vmul.f32 %v1107_v38, %v1107_v38  ;;  %v704_v57 = vmul.f32 %v42_v44, %v42_v44  ;;  %v710_v31 = vrot.slane %v697_v43, 4 }
  0x2c   :  { %v604_v58 = vcombine.low %v550_v39, %v556_v50  ;;  %v716_v33 = vrot.slane %v698_v45, 4  ;;  %v722_v59 = vrot.slane %v699_v48, 4  ;;  %v633_v60 = vcombine.low %v611_v51, %v618_v54 }
  0x2d   :  { %v728_v34 = vrot.slane %v700_v49, 4  ;;  %v734_v35 = vrot.slane %v701_v52, 4  ;;  %v740_v61 = vrot.slane %v702_v53, 4  ;;  %v711_v36 = vadd.f32 %v710_v31, %v697_v43 }
  0x2e   :  { %v632_v62 = vrot.slane %v604_v58, %v1100_v29  ;;  %v717_v37 = vadd.f32 %v716_v33, %v698_v45  ;;  %v723_v63 = vadd.f32 %v722_v59, %v699_v48  ;;  %v641_v0 = vrot.slane %v633_v60, %v1100_v29 }
  0x2f   :  { %v729_v2 = vadd.f32 %v728_v34, %v700_v49  ;;  %v735_v4 = vadd.f32 %v734_v35, %v701_v52  ;;  %v741_v5 = vadd.f32 %v740_v61, %v702_v53  ;;  %v712_v44 = vrot.slane %v711_v36, 2 }
  0x30   :  { %v634_v38 = vcombine.low %v625_v55, %v632_v62  ;;  %v718_v6 = vrot.slane %v717_v37, 2  ;;  %v724_v11 = vrot.slane %v723_v63, 2  ;;  %v746_v15 = vrot.slane %v703_v56, 4 }
  0x31   :  { %v730_v12 = vrot.slane %v729_v2, 2  ;;  %v736_v13 = vrot.slane %v735_v4, 2  ;;  %v742_v14 = vrot.slane %v741_v5, 2  ;;  %v713_v18 = vadd.f32 %v712_v44, %v711_v36 }
  0x32   :  { %v648_v17 = vrot.slane %v634_v38, %v1100_v29  ;;  %v719_v19 = vadd.f32 %v718_v6, %v717_v37  ;;  %v725_v20 = vadd.f32 %v724_v11, %v723_v63  ;;  %v747_v24 = vadd.f32 %v746_v15, %v703_v56 }
  0x33   :  { %v731_v21 = vadd.f32 %v730_v12, %v729_v2  ;;  %v737_v22 = vadd.f32 %v736_v13, %v735_v4  ;;  %v743_v23 = vadd.f32 %v742_v14, %v741_v5  ;;  %v714_v26 = vrot.slane %v713_v18, 1 }
  0x34   :  { %v649_v25 = vcombine.low %v641_v0, %v648_v17  ;;  %v720_v27 = vrot.slane %v719_v19, 1  ;;  %v726_v28 = vrot.slane %v725_v20, 1  ;;  %v748_v39 = vrot.slane %v747_v24, 2 }
  0x35   :  { %v732_v32 = vrot.slane %v731_v21, 1  ;;  %v715_v41 = vadd.f32 %v714_v26, %v713_v18  ;;  %v738_v43 = vrot.slane %v737_v22, 1  ;;  %v744_v45 = vrot.slane %v743_v23, 1 }
  0x36   :  { %v721_v42 = vadd.f32 %v720_v27, %v719_v19  ;;  %v727_v46 = vadd.f32 %v726_v28, %v725_v20  ;;  %v749_v48 = vadd.f32 %v748_v39, %v747_v24  ;;  %v752_v49 = vrot.slane %v704_v57, 4 }
  0x37   :  { %v733_v47 = vadd.f32 %v732_v32, %v731_v21  ;;  %v739_v51 = vadd.f32 %v738_v43, %v737_v22  ;;  %v745_v52 = vadd.f32 %v744_v45, %v743_v23  ;;  %973 = vrcp.f32 %v1110_v40  ;;  %v43_v21 = vld [vmem:[#allocation5 + $0x40] sm:$0xff]  ;;  %v44_v22 = vld [vmem:[#allocation5 + $0x48] sm:$0xff] }
  0x38   :  { %v753_v50 = vadd.f32 %v752_v49, %v704_v57  ;;  %v750_v53 = vrot.slane %v749_v48, 1  ;;  %v802_v55 = vcombine.low %v715_v41, %v721_v42  ;;  %v965_v35 = vadd.f32 -1.0, %v1110_v40 }
  0x39   :  { %v803_v56 = vcombine.low %v727_v46, %v733_v47  ;;  %v804_v31 = vcombine.low %v739_v51, %v745_v52  ;;  %v557_v23 = vrot.slane %v43_v21, 4  ;;  %v563_v24 = vrot.slane %v44_v22, 4 }
  0x3a   :  { %v754_v54 = vrot.slane %v753_v50, 2  ;;  %v751_v33 = vadd.f32 %v750_v53, %v749_v48  ;;  %v812_v60 = vrot.slane %v802_v55, %v1100_v29  ;;  %975 = vrcp.f32 %v965_v35 }
  0x3b   :  { %v819_v34 = vrot.slane %v803_v56, %v1100_v29  ;;  %v826_v62 = vrot.slane %v804_v31, %v1100_v29  ;;  %v706_v26 = vmul.f32 %v44_v22, %v44_v22  ;;  %v558_v27 = vadd.f32 %v557_v23, %v43_v21 }
  0x3c   :  { %v755_v58 = vadd.f32 %v754_v54, %v753_v50  ;;  %v564_v28 = vadd.f32 %v563_v24, %v44_v22  ;;  %v120_v50 = vadd.s32 1408, %v1061_v1  ;;  %v121_v55 = vadd.s32 1536, %v1061_v1 }
  0x3d   :  { %v834_v36 = vcombine.low %v812_v60, %v819_v34  ;;  %v764_v39 = vrot.slane %v706_v26, 4  ;;  %v559_v41 = vrot.slane %v558_v27, 2  ;;  %vm1037_vm5 = vmmov 1  }
  0x3e   :  { %v756_v59 = vrot.slane %v755_v58, 1  ;;  %v565_v42 = vrot.slane %v564_v28, 2  ;;  %vm144_vm15 = vcmp.lt.s32.totalorder %v120_v50, 1467  ;;  %vm169_vm3 = vcmp.ge.s32.totalorder %v121_v55, 1566 }
  0x3f   :  { %v842_v2 = vrot.slane %v834_v36, %v1100_v29  ;;  %v765_v45 = vadd.f32 %v764_v39, %v706_v26  ;;  %v560_v46 = vadd.f32 %v559_v41, %v558_v27 }
  0x40   :  { %v757_v61 = vadd.f32 %v756_v59, %v755_v58  ;;  %v566_v47 = vadd.f32 %v565_v42, %v564_v28 }
  0x41   :  { %v974_v37 = vpop.eup %973  ;;  %v766_v49 = vrot.slane %v765_v45, 2  ;;  %v561_v51 = vrot.slane %v560_v46, 1 }
  0x42   :  { %v805_v57 = vcombine.low %v751_v33, %v757_v61  ;;  %v906_v4 = vmul.f32 %v974_v37, %v649_v25  ;;  %v567_v52 = vrot.slane %v566_v47, 1 }
  0x43   :  { %v767_v54 = vadd.f32 %v766_v49, %v765_v45  ;;  %v1132_v58 = vadd.f32 %v561_v51, %v560_v46 }
  0x44   :  { %v833_v63 = vrot.slane %v805_v57, %v1100_v29  ;;  %vm935_vm11 = vcmp.ne.f32.partialorder %v906_v4, %v906_v4  ;;  %v909_v44 = vmul.f32 %v906_v4, %v649_v25  ;;  %v976_v40 = vpop.eup %975  ;;  %v705_v25 = vmul.f32 %v43_v21, %v43_v21 }
  0x45   :  { %v937_v6 = vsel %vm935_vm11, 0.0, %v906_v4  ;;  %v1134_v31 = vadd.f32 %v567_v52, %v566_v47  ;;  %v768_v59 = vrot.slane %v767_v54, 1 }
  0x46   :  { %v835_v0 = vcombine.low %v826_v62, %v833_v63  ;;  %939 = vst [vmem:[#allocation8] ss:$2 sm:$0xff] %v937_v6  ;;  %v758_v32 = vrot.slane %v705_v25, 4 }
  0x47   :  { %v650_v1 = vcombine.low %v1132_v58, %v1134_v31  ;;  %v1144_v57 = vadd.f32 %v768_v59, %v767_v54 }
  0x48   :  { %v849_v5 = vrot.slane %v835_v0, %v1100_v29  ;;  %v759_v43 = vadd.f32 %v758_v32, %v705_v25 }
  0x4a   :  { %v850_v38 = vcombine.low %v842_v2, %v849_v5  ;;  %v760_v48 = vrot.slane %v759_v43, 2 }
  0x4c   :  { %v911_v11 = vsub.f32 %v850_v38, %v909_v44  ;;  %v761_v53 = vadd.f32 %v760_v48, %v759_v43 }
  0x4e   :  { %v916_v12 = vmul.f32 %v976_v40, %v911_v11  ;;  %v762_v33 = vrot.slane %v761_v53, 1 }
  0x50   :  { %v919_v13 = vmax.f32 %v916_v12, 0.0  ;;  %v1140_v34 = vadd.f32 %v762_v33, %v761_v53 }
  0x52   :  { %977 = vrsqrt.f32 %v919_v13  ;;  %vm923_vm12 = vcmp.eq.f32.partialorder %v919_v13, inf  ;;  %v926_v15 = vand.u32 2147483648, %v919_v13  ;;  %vm925_vm13 = vcmp.eq.f32.partialorder %v919_v13, 0.0 }
  0x5c   :  { %v978_v14 = vpop.eup %977 }
  0x5d   :  { %v922_v17 = vmul.f32 %v978_v14, %v919_v13 }
  0x5f   :  { %v924_v18 = vsel %vm923_vm12, %v919_v13, %v922_v17 }
  0x60   :  { %v927_v19 = vsel %vm925_vm13, %v926_v15, %v924_v18 }
  0x61   :  { %vm942_vm14 = vcmp.ne.f32.partialorder %v927_v19, %v927_v19 }
  0x62   :  { %v944_v20 = vsel %vm942_vm14, 0.0, %v927_v19 }
  0x63   :  { %947 = vst [vmem:[#allocation8 + $0x1] ss:$2 sm:$0xff] %v944_v20 }
  0xac   :  { %v93_v56 = vpop.xlane.xlu0 %92 }
  0xad   :  { %vm94_vm1 = vcmp.gt.f32.partialorder %v93_v56, 0.0  ;;  %v658_v56 = vrot.slane %v650_v1, %v1100_v29 }
  0xae   :  { %vm206_vm2 = vmand %vm64_vm0, %vm94_vm1 }
  0xaf   :  { %vm207_vm4 = vmand %vm144_vm15, %vm94_vm1 }
  0xb0   :  { %v111_v60 = vpop.xlane.xlu0 %110  ;;  %vm271_vm6 = vmxor %vm206_vm2, %vm1037_vm5 }
  0xb1   :  { %vm112_vm7 = vcmp.gt.f32.partialorder %v111_v60, 0.0  ;;  %vm272_vm8 = vmxor %vm207_vm4, %vm1037_vm5  ;;  %v299_v35 = vsel %vm271_vm6, %v1069_v7, 0.0  ;;  %v314_v61 = vsel %vm271_vm6, 1.0, %v1034_v10 }
  0xb2   :  { %vm247_vm11 = vmand %vm169_vm3, %vm112_vm7  ;;  %v300_v3 = vsel %vm272_vm8, %v1071_v8, 0.0  ;;  %v315_v62 = vsel %vm272_vm8, 1.0, %v1034_v10  ;;  %v377_v36 = vrot.slane %v314_v61, 4  ;;  %v569_v37 = vrot.slane %v299_v35, 4 }
  0xb3   :  { %vm273_vm0 = vmxor %vm247_vm11, %vm1037_vm5  ;;  %v383_v63 = vrot.slane %v315_v62, 4  ;;  %v575_v0 = vrot.slane %v300_v3, 4  ;;  %v707_v2 = vmul.f32 %v299_v35, %v299_v35  ;;  %v708_v4 = vmul.f32 %v300_v3, %v300_v3 }
  0xb4   :  { %v301_v5 = vsel %vm273_vm0, %v1073_v9, 0.0  ;;  %v316_v7 = vsel %vm273_vm0, 1.0, %v1034_v10  ;;  %v378_v38 = vadd.f32 %v377_v36, %v314_v61  ;;  %v570_v44 = vadd.f32 %v569_v37, %v299_v35 }
  0xb5   :  { %v384_v6 = vadd.f32 %v383_v63, %v315_v62  ;;  %v389_v40 = vsel %vm89_vm9, %v316_v7, 0.0  ;;  %v576_v11 = vadd.f32 %v575_v0, %v300_v3  ;;  %v581_v8 = vsel %vm89_vm9, %v301_v5, 0.0 }
  0xb6   :  { %v379_v12 = vrot.slane %v378_v38, 2  ;;  %v390_v13 = vrot.slane %v389_v40, 4  ;;  %v571_v14 = vrot.slane %v570_v44, 2  ;;  %v582_v15 = vrot.slane %v581_v8, 4 }
  0xb7   :  { %v385_v17 = vrot.slane %v384_v6, 2  ;;  %v577_v18 = vrot.slane %v576_v11, 2  ;;  %v709_v19 = vmul.f32 %v301_v5, %v301_v5  ;;  %v770_v20 = vrot.slane %v707_v2, 4 }
  0xb8   :  { %v380_v21 = vadd.f32 %v379_v12, %v378_v38  ;;  %v391_v9 = vadd.f32 %v390_v13, %v389_v40  ;;  %v572_v22 = vadd.f32 %v571_v14, %v570_v44  ;;  %v583_v10 = vadd.f32 %v582_v15, %v581_v8  ;;  %v303_v12 = vld [vmem:[#allocation2 + $0x8] sm:$0x1f]  ;;  %v508_v13 = vld [vmem:[#allocation3 + $0x8] sm:$0x1f] }
  0xb9   :  { %v386_v23 = vadd.f32 %v385_v17, %v384_v6  ;;  %v578_v24 = vadd.f32 %v577_v18, %v576_v11  ;;  %v771_v25 = vadd.f32 %v770_v20, %v707_v2  ;;  %v776_v26 = vrot.slane %v708_v4, 4 }
  0xba   :  { %v381_v27 = vrot.slane %v380_v21, 1  ;;  %v392_v28 = vrot.slane %v391_v9, 2  ;;  %v573_v32 = vrot.slane %v572_v22, 1  ;;  %v584_v39 = vrot.slane %v583_v10, 2 }
  0xbb   :  { %v387_v41 = vrot.slane %v386_v23, 1  ;;  %v579_v42 = vrot.slane %v578_v24, 1  ;;  %v772_v43 = vrot.slane %v771_v25, 2  ;;  %v777_v45 = vadd.f32 %v776_v26, %v708_v4 }
  0xbc   :  { %v382_v46 = vadd.f32 %v381_v27, %v380_v21  ;;  %v393_v47 = vadd.f32 %v392_v28, %v391_v9  ;;  %v574_v48 = vadd.f32 %v573_v32, %v572_v22  ;;  %v585_v49 = vadd.f32 %v584_v39, %v583_v10 }
  0xbd   :  { %v388_v50 = vadd.f32 %v387_v41, %v386_v23  ;;  %v580_v51 = vadd.f32 %v579_v42, %v578_v24  ;;  %v773_v52 = vadd.f32 %v772_v43, %v771_v25  ;;  %v778_v53 = vrot.slane %v777_v45, 2  ;;  %v696_v24 = vld [vmem:[#allocation4 + $0x8] sm:$0x1f] }
  0xbe   :  { %v394_v54 = vrot.slane %v393_v47, 1  ;;  %v586_v55 = vrot.slane %v585_v49, 1  ;;  %v782_v58 = vsel %vm89_vm9, %v709_v19, 0.0  ;;  %v851_v62 = vcombine.low %v1140_v34, %v1144_v57 }
  0xbf   :  { %v459_v31 = vcombine.low %v382_v46, %v388_v50  ;;  %v651_v33 = vcombine.low %v574_v48, %v580_v51  ;;  %v774_v59 = vrot.slane %v773_v52, 1  ;;  %v779_v60 = vadd.f32 %v778_v53, %v777_v45 }
  0xc0   :  { %v395_v35 = vadd.f32 %v394_v54, %v393_v47  ;;  %v587_v61 = vadd.f32 %v586_v55, %v585_v49  ;;  %v783_v3 = vrot.slane %v782_v58, 4  ;;  %v859_v8 = vrot.slane %v851_v62, %v1100_v29 }
  0xc1   :  { %v473_v36 = vrot.slane %v459_v31, %v1100_v29  ;;  %v665_v37 = vrot.slane %v651_v33, %v1100_v29  ;;  %v775_v63 = vadd.f32 %v774_v59, %v773_v52  ;;  %v780_v0 = vrot.slane %v779_v60, 1 }
  0xc2   :  { %v480_v1 = vrot.slane %v395_v35, %v1100_v29  ;;  %v672_v2 = vrot.slane %v587_v61, %v1100_v29  ;;  %v784_v4 = vadd.f32 %v783_v3, %v782_v58 }
  0xc3   :  { %v481_v5 = vcombine.low %v1103_v30, %v473_v36  ;;  %v673_v7 = vcombine.low %v658_v56, %v665_v37  ;;  %v781_v38 = vadd.f32 %v780_v0, %v779_v60 }
  0xc4   :  { %v495_v44 = vrot.slane %v480_v1, %v1100_v29  ;;  %v687_v6 = vrot.slane %v672_v2, %v1100_v29  ;;  %v785_v34 = vrot.slane %v784_v4, 2 }
  0xc5   :  { %v488_v57 = vrot.slane %v481_v5, %v1100_v29  ;;  %v680_v40 = vrot.slane %v673_v7, %v1100_v29  ;;  %v852_v11 = vcombine.low %v775_v63, %v781_v38 }
  0xc6   :  { %v786_v14 = vadd.f32 %v785_v34, %v784_v4 }
  0xc7   :  { %v496_v15 = vcombine.low %v488_v57, %v495_v44  ;;  %v688_v17 = vcombine.low %v680_v40, %v687_v6  ;;  %v866_v30 = vrot.slane %v852_v11, %v1100_v29 }
  0xc8   :  { %v787_v18 = vrot.slane %v786_v14, 1 }
  0xc9   :  { %v500_v19 = vadd.f32 %v496_v15, %v303_v12  ;;  %v692_v20 = vadd.f32 %v688_v17, %v508_v13  ;;  %v874_v21 = vcombine.low %v859_v8, %v866_v30 }
  0xca   :  { %v788_v9 = vadd.f32 %v787_v18, %v786_v14 }
  0xcb   :  { %506 = vst.msk [vmem:[#allocation2 + $0x8] sm:$0x1f] %vm1087_vm10, %v500_v19  ;;  %694 = vst.msk [vmem:[#allocation3 + $0x8] sm:$0x1f] %vm1087_vm10, %v692_v20  ;;  %v881_v10 = vrot.slane %v874_v21, %v1100_v29 }
  0xcc   :  { %v873_v22 = vrot.slane %v788_v9, %v1100_v29 }
  0xce   :  { %v888_v23 = vrot.slane %v873_v22, %v1100_v29 }
  0xd0   :  { %v889_v25 = vcombine.low %v881_v10, %v888_v23 }
  0xd2   :  { %v893_v26 = vadd.f32 %v889_v25, %v696_v24  ;;  %v900_v27 = vld [vmem:[#allocation2 + $0x8] sm:$0x1f]  ;;  %v902_v39 = vld [vmem:[#allocation3 + $0x8] sm:$0x1f] }
  0xd3   :  { %979 = vrcp.f32 %v900_v27  ;;  %v966_v28 = vadd.f32 -1.0, %v900_v27 }
  0xd4   :  { %895 = vst.msk [vmem:[#allocation4 + $0x8] sm:$0x1f] %vm1087_vm10, %v893_v26 }
  0xd5   :  { %981 = vrcp.f32 %v966_v28 }
  0xdb   :  { %v904_v43 = vld [vmem:[#allocation4 + $0x8] sm:$0x1f] }
  0xdd   :  { %v980_v32 = vpop.eup %979 }
  0xde   :  { %v908_v41 = vmul.f32 %v980_v32, %v902_v39 }
  0xdf   :  { %v982_v29 = vpop.eup %981 }
  0xe0   :  { %v910_v42 = vmul.f32 %v908_v41, %v902_v39  ;;  %vm936_vm9 = vcmp.ne.f32.partialorder %v908_v41, %v908_v41 }
  0xe1   :  { %v938_v45 = vsel %vm936_vm9, 0.0, %v908_v41 }
  0xe2   :  { %v912_v46 = vsub.f32 %v904_v43, %v910_v42  ;;  %941 = vst.msk [vmem:[#allocation8 + $0x10] ss:$2 sm:$0x1f] %vm1087_vm10, %v938_v45 }
  0xe4   :  { %v918_v47 = vmul.f32 %v982_v29, %v912_v46 }
  0xe6   :  { %v920_v48 = vmax.f32 %v918_v47, 0.0 }
  0xe8   :  { %983 = vrsqrt.f32 %v920_v48  ;;  %vm930_vm12 = vcmp.eq.f32.partialorder %v920_v48, inf  ;;  %v933_v51 = vand.u32 2147483648, %v920_v48  ;;  %vm932_vm13 = vcmp.eq.f32.partialorder %v920_v48, 0.0 }
  0xf2   :  { %v984_v49 = vpop.eup %983 }
  0xf3   :  { %v929_v50 = vmul.f32 %v984_v49, %v920_v48 }
  0xf5   :  { %v931_v52 = vsel %vm930_vm12, %v920_v48, %v929_v50 }
  0xf6   :  { %v934_v53 = vsel %vm932_vm13, %v933_v51, %v931_v52 }
  0xf7   :  { %vm943_vm14 = vcmp.ne.f32.partialorder %v934_v53, %v934_v53 }
  0xf8   :  { %v945_v54 = vsel %vm943_vm14, 0.0, %v934_v53 }
  0xf9   :  { %949 = vst.msk [vmem:[#allocation8 + $0x11] ss:$2 sm:$0x1f] %vm1087_vm10, %v945_v54 }
  0xfa   :  { %1018 = shalt.err (!%p1015_p12)
}
  0xfb   :  { %s1019_s22 = scalar_lea.hbm %s1193_s1, 416 }
  0xfc   :  { %p1020_p13 = scmp.ne.s32.totalorder %s1193_s1, %s1019_s22  ;;  %p1023_p0 = scmp.lt.u32.totalorder %s1019_s22, %s1193_s1 }
  0xfe   :  { %p1025_p1 = pnand %p1023_p0, %p1020_p13 }
 0x100   :  { %1028 = shalt.err (!%p1025_p1)
}
 0x101   :  { %959 = dma.vmem_to_hbm [thread:$0]  %s957_s18, 416, %s1193_s1, [#allocation7]  }
 0x102   :  { %1031 = dma.done.wait [#allocation7], 416  }
 0x103   :  { %1032 = vsyncadd [#allocation7], 4294966880 }
 0x104   :  { %963 = vsyncpa [#allocation6], 1 }
 0x105   :  { %964 = vsyncpa [#allocation7], 1 }

</bundles_post_ra>
